<compile_context>
chip_gen: v5e
topology: v5e:2x2
jax: 0.10.0
libtpu: 0.0.40
codegen_flags: <defaults>
</compile_context>

<pallas_src>
import jax
import jax.numpy as jnp
from jax.experimental import pallas as pl
from jax.experimental.pallas import tpu as pltpu

BN_EPS = 1e-5


def _round_up(x, m):
    return ((x + m - 1) // m) * m


def _const_spec(arr):
    """Full-array block, same block every grid step -> stays VMEM resident."""
    nd = arr.ndim
    return pl.BlockSpec(arr.shape, lambda *_, _nd=nd: (0,) * _nd)


def _row0_batch_mask(nb, bt, base):
    """(8, bt) f32 MXU operand: row 0 = 1.0 for valid batch rows, else 0."""
    row = jax.lax.broadcasted_iota(jnp.int32, (8, bt), 0)
    col = jax.lax.broadcasted_iota(jnp.int32, (8, bt), 1) + base
    return jnp.where((row == 0) & (col < nb), 1.0, 0.0).astype(jnp.float32)


# --------------------------------------------------------------------------
# Kernels
# --------------------------------------------------------------------------

def _stats1_kernel(nb_ref, x_ref, w1_ref, sum_ref, sq_ref):
    # z1 = x @ W1  (bias dropped: exactly cancelled by BN mean subtraction).
    bt = x_ref.shape[0]
    mask = _row0_batch_mask(nb_ref[0], bt, pl.program_id(0) * bt)
    z = jnp.dot(x_ref[...], w1_ref[...], preferred_element_type=jnp.float32)
    # MXU reduction over the batch tile (padded rows contribute zero).
    sum_ref[0] = jnp.dot(mask, z, preferred_element_type=jnp.float32)
    sq_ref[0] = jnp.dot(mask, z * z, preferred_element_type=jnp.float32)


def _stats2_kernel(nb_ref, x_ref, w1_ref, sc1_ref, sh1_ref, w2_ref,
                   sum_ref, sq_ref):
    bt = x_ref.shape[0]
    mask = _row0_batch_mask(nb_ref[0], bt, pl.program_id(0) * bt)
    z1 = jnp.dot(x_ref[...], w1_ref[...], preferred_element_type=jnp.float32)
    a1 = jnp.maximum(z1 * sc1_ref[...] + sh1_ref[...], 0.0).astype(jnp.bfloat16)
    z2 = jnp.dot(a1, w2_ref[...], preferred_element_type=jnp.float32)
    sum_ref[0] = jnp.dot(mask, z2, preferred_element_type=jnp.float32)
    sq_ref[0] = jnp.dot(mask, z2 * z2, preferred_element_type=jnp.float32)


def _final_kernel(x_ref, w1_ref, sc1_ref, sh1_ref, w2_ref, sc2_ref, sh2_ref,
                  w3_ref, b3_ref, o_ref):
    z1 = jnp.dot(x_ref[...], w1_ref[...], preferred_element_type=jnp.float32)
    a1 = jnp.maximum(z1 * sc1_ref[...] + sh1_ref[...], 0.0).astype(jnp.bfloat16)
    z2 = jnp.dot(a1, w2_ref[...], preferred_element_type=jnp.float32)
    a2 = jnp.maximum(z2 * sc2_ref[...] + sh2_ref[...], 0.0).astype(jnp.bfloat16)
    z3 = jnp.dot(a2, w3_ref[...], preferred_element_type=jnp.float32) + b3_ref[...]
    # sigmoid(z) = 0.5 * (1 + tanh(z/2)): single EUP op, no approx-recip error.
    o_ref[...] = (0.5 + 0.5 * jnp.tanh(0.5 * z3)).astype(o_ref.dtype)


def _fused_kernel(nb_ref, x_ref, w1_ref, g1_ref, be1_ref, w2_ref, g2_ref,
                  be2_ref, w3_ref, b3_ref, o_ref):
    # Whole batch resident in VMEM: stats -> fold -> apply, all on-chip.
    bp = x_ref.shape[0]
    nb = nb_ref[0]
    inv_n = 1.0 / nb.astype(jnp.float32)
    mask = _row0_batch_mask(nb, bp, 0)

    def bn_fold(z, gamma, beta):
        s = jnp.dot(mask, z, preferred_element_type=jnp.float32)
        q = jnp.dot(mask, z * z, preferred_element_type=jnp.float32)
        mean = s[0:1, :] * inv_n
        var = jnp.maximum(q[0:1, :] * inv_n - mean * mean, 0.0)
        scale = gamma * jax.lax.rsqrt(var + BN_EPS)
        shift = beta - mean * scale
        return scale, shift

    z1 = jnp.dot(x_ref[...], w1_ref[...], preferred_element_type=jnp.float32)
    sc1, sh1 = bn_fold(z1, g1_ref[...], be1_ref[...])
    a1 = jnp.maximum(z1 * sc1 + sh1, 0.0).astype(jnp.bfloat16)

    z2 = jnp.dot(a1, w2_ref[...], preferred_element_type=jnp.float32)
    sc2, sh2 = bn_fold(z2, g2_ref[...], be2_ref[...])
    a2 = jnp.maximum(z2 * sc2 + sh2, 0.0).astype(jnp.bfloat16)

    z3 = jnp.dot(a2, w3_ref[...], preferred_element_type=jnp.float32) + b3_ref[...]
    o_ref[...] = (0.5 + 0.5 * jnp.tanh(0.5 * z3)).astype(o_ref.dtype)


# --------------------------------------------------------------------------
# Wrapper
# --------------------------------------------------------------------------

def decoder_mlp_forward(x, params, *, block_b=2048, fused_max_b=4096):
    """Forward pass of decoder_MLP (train-mode BatchNorm, sigmoid output)."""
    (w1, b1, g1, be1, w2, b2, g2, be2, w3, b3) = params
    del b1, b2  # exactly cancelled by train-mode BatchNorm mean subtraction

    B, d_in = x.shape
    f1 = w1.shape[1]
    f2 = w2.shape[1]
    d_out = w3.shape[1]
    if B < 2:
        raise ValueError("train-mode BatchNorm1d needs batch >= 2 "
                         "(PyTorch raises for B == 1).")

    # bf16 MXU operands; all BN / accumulation math stays f32.
    w1b = w1.astype(jnp.bfloat16)
    w2b = w2.astype(jnp.bfloat16)
    w3b = w3.astype(jnp.bfloat16)
    g1f = g1.reshape(1, f1).astype(jnp.float32)
    be1f = be1.reshape(1, f1).astype(jnp.float32)
    g2f = g2.reshape(1, f2).astype(jnp.float32)
    be2f = be2.reshape(1, f2).astype(jnp.float32)
    b3f = b3.reshape(1, d_out).astype(jnp.float32)
    nb = jnp.array([B], jnp.int32)          # scalar-prefetch (SMEM) batch size

    # ---- fused single-kernel path: x read from HBM exactly once -------------
    if B <= fused_max_b:
        bp = _round_up(B, 16)
        x_p = x.astype(jnp.bfloat16)
        if bp != B:
            x_p = jnp.pad(x_p, ((0, bp - B), (0, 0)))
        out = pl.pallas_call(
            _fused_kernel,
            out_shape=jax.ShapeDtypeStruct((bp, d_out), jnp.float32),
            grid_spec=pltpu.PrefetchScalarGridSpec(
                num_scalar_prefetch=1,
                grid=(1,),
                in_specs=[_const_spec(x_p), _const_spec(w1b), _const_spec(g1f),
                          _const_spec(be1f), _const_spec(w2b), _const_spec(g2f),
                          _const_spec(be2f), _const_spec(w3b), _const_spec(b3f)],
                out_specs=pl.BlockSpec((bp, d_out), lambda *_: (0, 0))),
            compiler_params=pltpu.CompilerParams(
                dimension_semantics=("arbitrary",)),
        )(nb, x_p, w1b, g1f, be1f, w2b, g2f, be2f, w3b, b3f)
        return out[:B] if bp != B else out

    # ---- tiled three-pass path (full-batch BN statistics) -------------------
    bt = _round_up(min(block_b, _round_up(B, 16)), 16)
    b_pad = _round_up(B, bt)
    if b_pad // bt < 2 and b_pad >= 32:
        # keep >= 2 grid tiles so both v7x TensorCores get work
        bt = _round_up((b_pad + 1) // 2, 16)
        b_pad = _round_up(B, bt)
    n_tiles = b_pad // bt

    x_p = x.astype(jnp.bfloat16)
    if b_pad != B:
        x_p = jnp.pad(x_p, ((0, b_pad - B), (0, 0)))

    cpar = pltpu.CompilerParams(dimension_semantics=("parallel",))
    x_spec = pl.BlockSpec((bt, d_in), lambda i, *_: (i, 0))

    def _stats_out(f):
        shape = (jax.ShapeDtypeStruct((n_tiles, 8, f), jnp.float32),
                 jax.ShapeDtypeStruct((n_tiles, 8, f), jnp.float32))
        specs = [pl.BlockSpec((1, 8, f), lambda i, *_: (i, 0, 0)),
                 pl.BlockSpec((1, 8, f), lambda i, *_: (i, 0, 0))]
        return shape, specs

    def _fold_bn(sums, sqs, gamma, beta):
        # Full-batch (biased) statistics folded into one scale/shift pair.
        s = jnp.sum(sums, axis=(0, 1))
        q = jnp.sum(sqs, axis=(0, 1))
        mean = s / B
        var = jnp.maximum(q / B - mean * mean, 0.0)   # cancellation safety
        scale = gamma.reshape(-1) * jax.lax.rsqrt(var + BN_EPS)
        shift = beta.reshape(-1) - mean * scale
        return scale.reshape(1, -1), shift.reshape(1, -1)

    # pass 1: statistics of z1 = x @ W1
    osh1, osp1 = _stats_out(f1)
    s1, q1 = pl.pallas_call(
        _stats1_kernel,
        out_shape=osh1,
        grid_spec=pltpu.PrefetchScalarGridSpec(
            num_scalar_prefetch=1, grid=(n_tiles,),
            in_specs=[x_spec, _const_spec(w1b)],
            out_specs=osp1),
        compiler_params=cpar,
    )(nb, x_p, w1b)
    scale1, shift1 = _fold_bn(s1, q1, g1f, be1f)

    # pass 2: statistics of z2 = relu(bn1(z1)) @ W2
    osh2, osp2 = _stats_out(f2)
    s2, q2 = pl.pallas_call(
        _stats2_kernel,
        out_shape=osh2,
        grid_spec=pltpu.PrefetchScalarGridSpec(
            num_scalar_prefetch=1, grid=(n_tiles,),
            in_specs=[x_spec, _const_spec(w1b), _const_spec(scale1),
                      _const_spec(shift1), _const_spec(w2b)],
            out_specs=osp2),
        compiler_params=cpar,
    )(nb, x_p, w1b, scale1, shift1, w2b)
    scale2, shift2 = _fold_bn(s2, q2, g2f, be2f)

    # pass 3: full forward with folded BN + sigmoid, unpadded d_out store
    flops = 2 * b_pad * (d_in * f1 + f1 * f2 + f2 * d_out)
    bytes_accessed = (2 * b_pad * d_in + 4 * b_pad * d_out
                      + 2 * (d_in * f1 + f1 * f2 + f2 * d_out)
                      + 4 * (2 * f1 + 2 * f2 + d_out))
    cost = pl.CostEstimate(flops=flops, transcendentals=b_pad * d_out,
                           bytes_accessed=bytes_accessed)
    out = pl.pallas_call(
        _final_kernel,
        out_shape=jax.ShapeDtypeStruct((b_pad, d_out), jnp.float32),
        grid=(n_tiles,),
        in_specs=[x_spec, _const_spec(w1b), _const_spec(scale1),
                  _const_spec(shift1), _const_spec(w2b), _const_spec(scale2),
                  _const_spec(shift2), _const_spec(w3b), _const_spec(b3f)],
        out_specs=pl.BlockSpec((bt, d_out), lambda i, *_: (i, 0)),
        compiler_params=cpar,
        cost_estimate=cost,
    )(x_p, w1b, scale1, shift1, w2b, scale2, shift2, w3b, b3f)

    return out[:B] if b_pad != B else out


# --------------------------------------------------------------------------
# Parameters / reference
# --------------------------------------------------------------------------

def init_params(key, dim_in=32, dim_lat=(32, 64), dim_out=16):
    """Deterministic synthetic parameter init (PyTorch-like uniform ranges)."""
    ks = jax.random.split(key, 6)

    def lin(kw, kb, fan_in, fan_out):
        bound = 1.0 / jnp.sqrt(fan_in)
        w = jax.random.uniform(kw, (fan_in, fan_out), jnp.float32, -bound, bound)
        b = jax.random.uniform(kb, (1, fan_out), jnp.float32, -bound, bound)
        return w, b

    w1, b1 = lin(ks[0], ks[1], dim_in, dim_lat[0])
    w2, b2 = lin(ks[2], ks[3], dim_lat[0], dim_lat[1])
    w3, b3 = lin(ks[4], ks[5], dim_lat[1], dim_out)

    # BatchNorm1d default init: weight=1, bias=0.
    g1 = jnp.ones((1, dim_lat[0]), jnp.float32)
    be1 = jnp.zeros((1, dim_lat[0]), jnp.float32)
    g2 = jnp.ones((1, dim_lat[1]), jnp.float32)
    be2 = jnp.zeros((1, dim_lat[1]), jnp.float32)

    return (w1, b1, g1, be1, w2, b2, g2, be2, w3, b3)


def reference_forward(x, params):
    """Pure-JAX f32 reference (keeps b1/b2, direct BN) for correctness check."""
    (w1, b1, g1, be1, w2, b2, g2, be2, w3, b3) = params

    def bn(h, g, be):
        m = jnp.mean(h, axis=0, keepdims=True)
        v = jnp.mean((h - m) ** 2, axis=0, keepdims=True)
        return (h - m) / jnp.sqrt(v + BN_EPS) * g + be

    h = jnp.maximum(bn(x @ w1 + b1, g1, be1), 0.0)
    h = jnp.maximum(bn(h @ w2 + b2, g2, be2), 0.0)
    return jax.nn.sigmoid(h @ w3 + b3)


if __name__ == "__main__":
    key = jax.random.PRNGKey(0)
    k_x, k_p, k_x2 = jax.random.split(key, 3)

    dim_in, dim_lat, dim_out = 32, (32, 64), 16
    params = init_params(k_p, dim_in=dim_in, dim_lat=dim_lat, dim_out=dim_out)

    # bf16 MXU operands -> compare against the f32 reference at 1e-2.
    TOL = 1e-2

    # Small batch: fused single-kernel path (whole batch resident in VMEM).
    B = 8
    x = jax.random.normal(k_x, (B, dim_in), jnp.float32)
    out = jax.block_until_ready(decoder_mlp_forward(x, params))
    ref = reference_forward(x, params)
    assert out.shape == (B, dim_out)
    err = float(jnp.max(jnp.abs(out - ref)))
    assert err < TOL, err

    # Larger, non-multiple-of-tile batch: force the tiled three-pass path.
    B2 = 1100
    x2 = jax.random.normal(k_x2, (B2, dim_in), jnp.float32)
    out2 = jax.block_until_ready(
        decoder_mlp_forward(x2, params, block_b=512, fused_max_b=0))
    ref2 = reference_forward(x2, params)
    assert out2.shape == (B2, dim_out)
    err2 = float(jnp.max(jnp.abs(out2 - ref2)))
    assert err2 < TOL, err2

    print("KERNEL_OK")
</pallas_src>

<mosaic_0001>
module attributes {stable_mosaic.version = 11 : i64} {
  func.func @_fused_kernel(%arg0: i32, %arg1: memref<1xi32, #tpu.memory_space<smem>>, %arg2: memref<16x32xbf16, #tpu.memory_space<vmem>>, %arg3: memref<32x32xbf16, #tpu.memory_space<vmem>>, %arg4: memref<1x32xf32, #tpu.memory_space<vmem>>, %arg5: memref<1x32xf32, #tpu.memory_space<vmem>>, %arg6: memref<32x64xbf16, #tpu.memory_space<vmem>>, %arg7: memref<1x64xf32, #tpu.memory_space<vmem>>, %arg8: memref<1x64xf32, #tpu.memory_space<vmem>>, %arg9: memref<64x16xbf16, #tpu.memory_space<vmem>>, %arg10: memref<1x16xf32, #tpu.memory_space<vmem>>, %arg11: memref<16x16xf32, #tpu.memory_space<vmem>>) attributes {dimension_semantics = [#tpu.dimension_semantics<arbitrary>], iteration_bounds = array<i64: 1>, scalar_prefetch = 1 : i64, scratch_operands = 0 : i64, tpu.core_type = #tpu.core_type<tc>, window_params = [{pipeline_mode = #tpu.pipeline_mode<synchronous>, transform_indices = @transform_0, window_bounds = array<i64: 16, 32>}, {pipeline_mode = #tpu.pipeline_mode<synchronous>, transform_indices = @transform_1, window_bounds = array<i64: 32, 32>}, {pipeline_mode = #tpu.pipeline_mode<synchronous>, transform_indices = @transform_2, window_bounds = array<i64: 1, 32>}, {pipeline_mode = #tpu.pipeline_mode<synchronous>, transform_indices = @transform_3, window_bounds = array<i64: 1, 32>}, {pipeline_mode = #tpu.pipeline_mode<synchronous>, transform_indices = @transform_4, window_bounds = array<i64: 32, 64>}, {pipeline_mode = #tpu.pipeline_mode<synchronous>, transform_indices = @transform_5, window_bounds = array<i64: 1, 64>}, {pipeline_mode = #tpu.pipeline_mode<synchronous>, transform_indices = @transform_6, window_bounds = array<i64: 1, 64>}, {pipeline_mode = #tpu.pipeline_mode<synchronous>, transform_indices = @transform_7, window_bounds = array<i64: 64, 16>}, {pipeline_mode = #tpu.pipeline_mode<synchronous>, transform_indices = @transform_8, window_bounds = array<i64: 1, 16>}, {pipeline_mode = #tpu.pipeline_mode<synchronous>, transform_indices = @transform_9, window_bounds = array<i64: 16, 16>}]} {
    %c0 = arith.constant 0 : index
    %0 = memref.load %arg1[%c0] : memref<1xi32, #tpu.memory_space<smem>>
    %1 = arith.sitofp %0 : i32 to f32
    %cst = arith.constant 1.000000e+00 : f32
    %2 = arith.divf %cst, %1 : f32
    %3 = tpu.iota {dimensions = array<i32: 0>} : vector<8x16xi32>
    %4 = tpu.iota {dimensions = array<i32: 1>} : vector<8x16xi32>
    %c0_i32 = arith.constant 0 : i32
    %5 = vector.broadcast %c0_i32 : i32 to vector<8x16xi32>
    %6 = arith.addi %4, %5 : vector<8x16xi32>
    %c0_i32_0 = arith.constant 0 : i32
    %7 = vector.broadcast %c0_i32_0 : i32 to vector<8x16xi32>
    %8 = arith.cmpi eq, %3, %7 : vector<8x16xi32>
    %9 = vector.broadcast %0 : i32 to vector<8x16xi32>
    %10 = arith.cmpi slt, %6, %9 : vector<8x16xi32>
    %11 = arith.andi %8, %10 : vector<8x16xi1>
    %cst_1 = arith.constant 1.000000e+00 : f32
    %cst_2 = arith.constant 0.000000e+00 : f32
    %12 = vector.broadcast %cst_1 : f32 to vector<8x16xf32>
    %13 = vector.broadcast %cst_2 : f32 to vector<8x16xf32>
    %14 = arith.select %11, %12, %13 : vector<8x16xi1>, vector<8x16xf32>
    %c0_3 = arith.constant 0 : index
    %c0_4 = arith.constant 0 : index
    %15 = vector.load %arg2[%c0_3, %c0_4] : memref<16x32xbf16, #tpu.memory_space<vmem>>, vector<16x32xbf16>
    %c0_5 = arith.constant 0 : index
    %c0_6 = arith.constant 0 : index
    %16 = vector.load %arg3[%c0_5, %c0_6] : memref<32x32xbf16, #tpu.memory_space<vmem>>, vector<32x32xbf16>
    %cst_7 = arith.constant dense<0.000000e+00> : vector<16x32xf32>
    %17 = tpu.matmul %15, %16, %cst_7 {dimension_numbers = #tpu.dot_dimension_numbers<[1], [0], [0], [1], [0, 0, 1, 1], [], []>} : vector<16x32xbf16>, vector<32x32xbf16>, vector<16x32xf32> -> vector<16x32xf32>
    %c0_8 = arith.constant 0 : index
    %c0_9 = arith.constant 0 : index
    %18 = vector.load %arg4[%c0_8, %c0_9] : memref<1x32xf32, #tpu.memory_space<vmem>>, vector<1x32xf32>
    %c0_10 = arith.constant 0 : index
    %c0_11 = arith.constant 0 : index
    %19 = vector.load %arg5[%c0_10, %c0_11] : memref<1x32xf32, #tpu.memory_space<vmem>>, vector<1x32xf32>
    %cst_12 = arith.constant dense<0.000000e+00> : vector<8x32xf32>
    %20 = tpu.matmul %14, %17, %cst_12 {dimension_numbers = #tpu.dot_dimension_numbers<[1], [0], [0], [1], [0, 0, 1, 1], [], []>} : vector<8x16xf32>, vector<16x32xf32>, vector<8x32xf32> -> vector<8x32xf32>
    %21 = arith.mulf %17, %17 : vector<16x32xf32>
    %cst_13 = arith.constant dense<0.000000e+00> : vector<8x32xf32>
    %22 = tpu.matmul %14, %21, %cst_13 {dimension_numbers = #tpu.dot_dimension_numbers<[1], [0], [0], [1], [0, 0, 1, 1], [], []>} : vector<8x16xf32>, vector<16x32xf32>, vector<8x32xf32> -> vector<8x32xf32>
    %23 = vector.extract_strided_slice %20 {offsets = [0, 0], sizes = [1, 32], strides = [1, 1]} : vector<8x32xf32> to vector<1x32xf32>
    %24 = vector.broadcast %2 : f32 to vector<1x32xf32>
    %25 = arith.mulf %23, %24 : vector<1x32xf32>
    %26 = vector.extract_strided_slice %22 {offsets = [0, 0], sizes = [1, 32], strides = [1, 1]} : vector<8x32xf32> to vector<1x32xf32>
    %27 = vector.broadcast %2 : f32 to vector<1x32xf32>
    %28 = arith.mulf %26, %27 : vector<1x32xf32>
    %29 = arith.mulf %25, %25 : vector<1x32xf32>
    %30 = arith.subf %28, %29 : vector<1x32xf32>
    %cst_14 = arith.constant 0.000000e+00 : f32
    %31 = vector.broadcast %cst_14 : f32 to vector<1x32xf32>
    %32 = arith.maximumf %30, %31 : vector<1x32xf32>
    %cst_15 = arith.constant 9.99999974E-6 : f32
    %33 = vector.broadcast %cst_15 : f32 to vector<1x32xf32>
    %34 = arith.addf %32, %33 : vector<1x32xf32>
    %35 = math.rsqrt %34 : vector<1x32xf32>
    %36 = arith.mulf %18, %35 : vector<1x32xf32>
    %37 = arith.mulf %25, %36 : vector<1x32xf32>
    %38 = arith.subf %19, %37 : vector<1x32xf32>
    %39 = vector.broadcast %36 : vector<1x32xf32> to vector<16x32xf32>
    %40 = arith.mulf %17, %39 : vector<16x32xf32>
    %41 = vector.broadcast %38 : vector<1x32xf32> to vector<16x32xf32>
    %42 = arith.addf %40, %41 : vector<16x32xf32>
    %cst_16 = arith.constant 0.000000e+00 : f32
    %43 = vector.broadcast %cst_16 : f32 to vector<16x32xf32>
    %44 = arith.maximumf %42, %43 : vector<16x32xf32>
    %45 = arith.truncf %44 : vector<16x32xf32> to vector<16x32xbf16>
    %c0_17 = arith.constant 0 : index
    %c0_18 = arith.constant 0 : index
    %46 = vector.load %arg6[%c0_17, %c0_18] : memref<32x64xbf16, #tpu.memory_space<vmem>>, vector<32x64xbf16>
    %cst_19 = arith.constant dense<0.000000e+00> : vector<16x64xf32>
    %47 = tpu.matmul %45, %46, %cst_19 {dimension_numbers = #tpu.dot_dimension_numbers<[1], [0], [0], [1], [0, 0, 1, 1], [], []>} : vector<16x32xbf16>, vector<32x64xbf16>, vector<16x64xf32> -> vector<16x64xf32>
    %c0_20 = arith.constant 0 : index
    %c0_21 = arith.constant 0 : index
    %48 = vector.load %arg7[%c0_20, %c0_21] : memref<1x64xf32, #tpu.memory_space<vmem>>, vector<1x64xf32>
    %c0_22 = arith.constant 0 : index
    %c0_23 = arith.constant 0 : index
    %49 = vector.load %arg8[%c0_22, %c0_23] : memref<1x64xf32, #tpu.memory_space<vmem>>, vector<1x64xf32>
    %cst_24 = arith.constant dense<0.000000e+00> : vector<8x64xf32>
    %50 = tpu.matmul %14, %47, %cst_24 {dimension_numbers = #tpu.dot_dimension_numbers<[1], [0], [0], [1], [0, 0, 1, 1], [], []>} : vector<8x16xf32>, vector<16x64xf32>, vector<8x64xf32> -> vector<8x64xf32>
    %51 = arith.mulf %47, %47 : vector<16x64xf32>
    %cst_25 = arith.constant dense<0.000000e+00> : vector<8x64xf32>
    %52 = tpu.matmul %14, %51, %cst_25 {dimension_numbers = #tpu.dot_dimension_numbers<[1], [0], [0], [1], [0, 0, 1, 1], [], []>} : vector<8x16xf32>, vector<16x64xf32>, vector<8x64xf32> -> vector<8x64xf32>
    %53 = vector.extract_strided_slice %50 {offsets = [0, 0], sizes = [1, 64], strides = [1, 1]} : vector<8x64xf32> to vector<1x64xf32>
    %54 = vector.broadcast %2 : f32 to vector<1x64xf32>
    %55 = arith.mulf %53, %54 : vector<1x64xf32>
    %56 = vector.extract_strided_slice %52 {offsets = [0, 0], sizes = [1, 64], strides = [1, 1]} : vector<8x64xf32> to vector<1x64xf32>
    %57 = vector.broadcast %2 : f32 to vector<1x64xf32>
    %58 = arith.mulf %56, %57 : vector<1x64xf32>
    %59 = arith.mulf %55, %55 : vector<1x64xf32>
    %60 = arith.subf %58, %59 : vector<1x64xf32>
    %cst_26 = arith.constant 0.000000e+00 : f32
    %61 = vector.broadcast %cst_26 : f32 to vector<1x64xf32>
    %62 = arith.maximumf %60, %61 : vector<1x64xf32>
    %cst_27 = arith.constant 9.99999974E-6 : f32
    %63 = vector.broadcast %cst_27 : f32 to vector<1x64xf32>
    %64 = arith.addf %62, %63 : vector<1x64xf32>
    %65 = math.rsqrt %64 : vector<1x64xf32>
    %66 = arith.mulf %48, %65 : vector<1x64xf32>
    %67 = arith.mulf %55, %66 : vector<1x64xf32>
    %68 = arith.subf %49, %67 : vector<1x64xf32>
    %69 = vector.broadcast %66 : vector<1x64xf32> to vector<16x64xf32>
    %70 = arith.mulf %47, %69 : vector<16x64xf32>
    %71 = vector.broadcast %68 : vector<1x64xf32> to vector<16x64xf32>
    %72 = arith.addf %70, %71 : vector<16x64xf32>
    %cst_28 = arith.constant 0.000000e+00 : f32
    %73 = vector.broadcast %cst_28 : f32 to vector<16x64xf32>
    %74 = arith.maximumf %72, %73 : vector<16x64xf32>
    %75 = arith.truncf %74 : vector<16x64xf32> to vector<16x64xbf16>
    %c0_29 = arith.constant 0 : index
    %c0_30 = arith.constant 0 : index
    %76 = vector.load %arg9[%c0_29, %c0_30] : memref<64x16xbf16, #tpu.memory_space<vmem>>, vector<64x16xbf16>
    %cst_31 = arith.constant dense<0.000000e+00> : vector<16x16xf32>
    %77 = tpu.matmul %75, %76, %cst_31 {dimension_numbers = #tpu.dot_dimension_numbers<[1], [0], [0], [1], [0, 0, 1, 1], [], []>} : vector<16x64xbf16>, vector<64x16xbf16>, vector<16x16xf32> -> vector<16x16xf32>
    %c0_32 = arith.constant 0 : index
    %c0_33 = arith.constant 0 : index
    %78 = vector.load %arg10[%c0_32, %c0_33] : memref<1x16xf32, #tpu.memory_space<vmem>>, vector<1x16xf32>
    %79 = vector.broadcast %78 : vector<1x16xf32> to vector<16x16xf32>
    %80 = arith.addf %77, %79 : vector<16x16xf32>
    %cst_34 = arith.constant 5.000000e-01 : f32
    %81 = vector.broadcast %cst_34 : f32 to vector<16x16xf32>
    %82 = arith.mulf %81, %80 : vector<16x16xf32>
    %83 = math.tanh %82 : vector<16x16xf32>
    %cst_35 = arith.constant 5.000000e-01 : f32
    %84 = vector.broadcast %cst_35 : f32 to vector<16x16xf32>
    %85 = arith.mulf %84, %83 : vector<16x16xf32>
    %cst_36 = arith.constant 5.000000e-01 : f32
    %86 = vector.broadcast %cst_36 : f32 to vector<16x16xf32>
    %87 = arith.addf %86, %85 : vector<16x16xf32>
    %c0_37 = arith.constant 0 : index
    %c0_38 = arith.constant 0 : index
    %88 = vector.load %arg11[%c0_37, %c0_38] : memref<16x16xf32, #tpu.memory_space<vmem>>, vector<16x16xf32>
    tpu.vector_store %arg11[%c0_37, %c0_38], %87 {strides = array<i32>} : memref<16x16xf32, #tpu.memory_space<vmem>>, vector<16x16xf32>,
    return
  }
  func.func @transform_0(%arg0: i32, %arg1: memref<1xi32, #tpu.memory_space<smem>>) -> (i32, i32) {
    %c0_i32 = arith.constant 0 : i32
    %c0_i32_0 = arith.constant 0 : i32
    %c0_i32_1 = arith.constant 0 : i32
    return %c0_i32, %c0_i32_0 : i32, i32
  }
  func.func @transform_1(%arg0: i32, %arg1: memref<1xi32, #tpu.memory_space<smem>>) -> (i32, i32) {
    %c0_i32 = arith.constant 0 : i32
    %c0_i32_0 = arith.constant 0 : i32
    %c0_i32_1 = arith.constant 0 : i32
    return %c0_i32, %c0_i32_0 : i32, i32
  }
  func.func @transform_2(%arg0: i32, %arg1: memref<1xi32, #tpu.memory_space<smem>>) -> (i32, i32) {
    %c0_i32 = arith.constant 0 : i32
    %c0_i32_0 = arith.constant 0 : i32
    %c0_i32_1 = arith.constant 0 : i32
    return %c0_i32, %c0_i32_0 : i32, i32
  }
  func.func @transform_3(%arg0: i32, %arg1: memref<1xi32, #tpu.memory_space<smem>>) -> (i32, i32) {
    %c0_i32 = arith.constant 0 : i32
    %c0_i32_0 = arith.constant 0 : i32
    %c0_i32_1 = arith.constant 0 : i32
    return %c0_i32, %c0_i32_0 : i32, i32
  }
  func.func @transform_4(%arg0: i32, %arg1: memref<1xi32, #tpu.memory_space<smem>>) -> (i32, i32) {
    %c0_i32 = arith.constant 0 : i32
    %c0_i32_0 = arith.constant 0 : i32
    %c0_i32_1 = arith.constant 0 : i32
    return %c0_i32, %c0_i32_0 : i32, i32
  }
  func.func @transform_5(%arg0: i32, %arg1: memref<1xi32, #tpu.memory_space<smem>>) -> (i32, i32) {
    %c0_i32 = arith.constant 0 : i32
    %c0_i32_0 = arith.constant 0 : i32
    %c0_i32_1 = arith.constant 0 : i32
    return %c0_i32, %c0_i32_0 : i32, i32
  }
  func.func @transform_6(%arg0: i32, %arg1: memref<1xi32, #tpu.memory_space<smem>>) -> (i32, i32) {
    %c0_i32 = arith.constant 0 : i32
    %c0_i32_0 = arith.constant 0 : i32
    %c0_i32_1 = arith.constant 0 : i32
    return %c0_i32, %c0_i32_0 : i32, i32
  }
  func.func @transform_7(%arg0: i32, %arg1: memref<1xi32, #tpu.memory_space<smem>>) -> (i32, i32) {
    %c0_i32 = arith.constant 0 : i32
    %c0_i32_0 = arith.constant 0 : i32
    %c0_i32_1 = arith.constant 0 : i32
    return %c0_i32, %c0_i32_0 : i32, i32
  }
  func.func @transform_8(%arg0: i32, %arg1: memref<1xi32, #tpu.memory_space<smem>>) -> (i32, i32) {
    %c0_i32 = arith.constant 0 : i32
    %c0_i32_0 = arith.constant 0 : i32
    %c0_i32_1 = arith.constant 0 : i32
    return %c0_i32, %c0_i32_0 : i32, i32
  }
  func.func @transform_9(%arg0: i32, %arg1: memref<1xi32, #tpu.memory_space<smem>>) -> (i32, i32) {
    %c0_i32 = arith.constant 0 : i32
    %c0_i32_0 = arith.constant 0 : i32
    %c0_i32_1 = arith.constant 0 : i32
    return %c0_i32, %c0_i32_0 : i32, i32
  }
}

</mosaic_0001>

<bundles_post_ra>
// kernel: tpu_custom_call.1
= control target key start
LH: loop header
LB: loop body
LE: loop exit
PB: predicated region body
PF: predicated region fallthrough
CT: control target
= control target key end

     0   :  { %16 = vsyncpa [#allocation5], 0  ;;  %s757_s0 = inlined_call_operand.<no memory space> [shape: s32[1], index: 0, kind: input, shape index: {}]   ;;  %s758_s1 = inlined_call_operand.vmem [shape: bf16[16,32], index: 1, kind: input, shape index: {}]   ;;  %s759_s2 = inlined_call_operand.vmem [shape: bf16[32,32], index: 2, kind: input, shape index: {}]   ;;  %s760_s3 = inlined_call_operand.hbm [shape: f32[1,32], index: 3, kind: input, shape index: {}]   ;;  %s761_s4 = inlined_call_operand.hbm [shape: f32[1,32], index: 4, kind: input, shape index: {}]   ;;  %s762_s5 = inlined_call_operand.vmem [shape: bf16[32,64], index: 5, kind: input, shape index: {}]   ;;  %s763_s6 = inlined_call_operand.hbm [shape: f32[1,64], index: 6, kind: input, shape index: {}]   ;;  %s764_s7 = inlined_call_operand.hbm [shape: f32[1,64], index: 7, kind: input, shape index: {}]   ;;  %s765_s8 = inlined_call_operand.vmem [shape: bf16[64,16], index: 8, kind: input, shape index: {}]   ;;  %s766_s9 = inlined_call_operand.vmem [shape: f32[1,16], index: 9, kind: input, shape index: {}]   ;;  %s767_s10 = inlined_call_operand.hbm [shape: f32[16,16], index: 10, kind: output, shape index: {}]  }
   0x1   :  { %17 = vsyncpa [#allocation8], 0 }
   0x2   :  { %18 = vsyncpa [#allocation11], 0  ;;  %s40_s15 = sshll.u32 %s761_s4, 4  ;;  %s41_s15 = int_to_ptr.hbm [resolvable:$true] %s40_s15 }
   0x3   :  { %19 = vsyncpa [#allocation6], 0  ;;  %s635_s16 = smov [#allocation7]   ;;  %s29_s20 = sshll.u32 %s760_s3, 4  ;;  %s30_s20 = int_to_ptr.hbm [resolvable:$true] %s29_s20 }
   0x4   :  { %s42_s17 = sshll.u32 %s635_s16, 4  ;;  %s636_s21 = smov [#allocation4]   ;;  %s43_s17 = int_to_ptr.vmem [resolvable:$true] %s42_s17 }
   0x5   :  { %45 = dma.hbm_to_vmem [thread:$0]  %s41_s15, 16, %s43_s17, [#allocation8]  }
   0x6   :  { %s31_s22 = sshll.u32 %s636_s21, 4  ;;  %s53_s25 = sshll.u32 %s763_s6, 4  ;;  %s32_s22 = int_to_ptr.vmem [resolvable:$true] %s31_s22  ;;  %s54_s25 = int_to_ptr.hbm [resolvable:$true] %s53_s25 }
   0x7   :  { %34 = dma.hbm_to_vmem [thread:$0]  %s30_s20, 16, %s32_s22, [#allocation5]  }
   0x8   :  { %s64_s27 = sshll.u32 %s764_s7, 4  ;;  %s637_s28 = smov [#allocation9]   ;;  %s65_s27 = int_to_ptr.hbm [resolvable:$true] %s64_s27 }
   0x9   :  { %s55_s29 = sshll.u32 %s637_s28, 4  ;;  %s638_s3 = smov [#allocation10]   ;;  %s56_s29 = int_to_ptr.vmem [resolvable:$true] %s55_s29 }
   0xa   :  { %58 = dma.hbm_to_vmem [thread:$0]  %s54_s25, 16, %s56_s29, [#allocation8]  }
   0xb   :  { %s66_s30 = sshll.u32 %s638_s3, 4  ;;  %s67_s30 = int_to_ptr.vmem [resolvable:$true] %s66_s30 }
   0xc   :  { %69 = dma.hbm_to_vmem [thread:$0]  %s65_s27, 16, %s67_s30, [#allocation11]  }
   0xd   :  { %627 = dma.done.wait [#allocation5], 16  }
   0xe   :  { %628 = vsyncadd [#allocation5], 4294967280 }
   0xf   :  { %629 = dma.done.wait [#allocation8], 32  }
  0x10   :  { %630 = vsyncadd [#allocation8], 4294967264 }
  0x11   :  { %631 = dma.done.wait [#allocation11], 16  }
  0x12   :  { %632 = vsyncadd [#allocation11], 4294967280  ;;  %v479_v0 = vld [vmem:[%s759_s2 + $0x8] sm:$0xff]  ;;  %v478_v1 = vld [vmem:[%s759_s2] sm:$0xff]  ;;  %vm141_vm0 = vcmask 261120   ;;  %s92_s17 = scvt.s32.f32 %s757_s0  ;;  %v109_v12 = vlaneseq  ;;  %v114_v18 = vstv %s757_s0  ;;  %v639_v22 = vmov 0.0  }
  0x13   :  { %151 = vmatpush.bf16.msra.mxu0 %v479_v0  ;;  %v477_v2 = vld [vmem:[%s758_s1] sm:$0xff]  ;;  %vm161_vm8 = vcmask 130048   ;;  %v481_v27 = vld [vmem:[%s762_s5 + $0x8] sm:$0xff]  ;;  %v485_v60 = vld [vmem:[%s765_s8 + $0x18] sm:$0xff]  ;;  %vm385_vm15 = vcmask 523264   ;;  %s640_s29 = smov [#allocation12]  }
  0x14   :  { %v93_v3 = vstv %s92_s17  ;;  %v110_v16 = vshrl.u32 %v109_v12, 7  ;;  %v112_v17 = vand.u32 127, %v109_v12  ;;  %265 = vmatpush.bf16.msra.mxu3 %v481_v27  ;;  %v480_v28 = vld [vmem:[%s762_s5] sm:$0xff]  ;;  %v484_v62 = vld [vmem:[%s765_s8 + $0x10] sm:$0xff]  ;;  %v483_v0 = vld [vmem:[%s765_s8 + $0x8] sm:$0xff]  ;;  %s417_s3 = sshll.u32 %s640_s29, 4  ;;  %s418_s3 = int_to_ptr.vmem [resolvable:$true] %s417_s3 }
  0x15   :  { %497 = vrcp.f32 %v93_v3  ;;  %v105_v6 = vand.u32 2147483648, %v93_v3  ;;  %vm99_vm1 = vweird.f32 %v93_v3  ;;  %v103_v8 = vand.u32 2147483647, %v93_v3  ;;  %v159_v40 = vld [vmem:[#allocation4] sm:$0x1]  ;;  %s419_s11 = sshll.u32 %s767_s10, 4  ;;  %s420_s11 = int_to_ptr.hbm [resolvable:$true] %s419_s11 }
  0x16   :  { %vm113_vm5 = vcmp.eq.s32.totalorder %v110_v16, 0  ;;  %vm115_vm6 = vcmp.lt.s32.totalorder %v112_v17, %v114_v18  ;;  %v160_v44 = vld [vmem:[#allocation7] sm:$0x1]  ;;  %v274_v17 = vld [vmem:[#allocation10] sm:$0x1]  ;;  %s642_s7 = smov 8  }
  0x17   :  { %152 = vmatpush.bf16.msra.mxu0 %v478_v1  ;;  %v106_v10 = vor.u32 1.1754944e-38, %v105_v6  ;;  %vm104_vm4 = vcmp.eq.f32.partialorder %v103_v8, 8.507059e+37  ;;  %vm116_vm7 = vmand %vm113_vm5, %vm115_vm6 }
  0x18   :  { %v117_v23 = vsel %vm116_vm7, 1.0, %v639_v22  ;;  %266 = vmatpush.bf16.msra.mxu3 %v480_v28 }
  0x1a   :  { %446 = vmatmul.msk.bf16.vlgmr.msra.gmra.mxu0 %vm141_vm0, %v477_v2 }
  0x1b   :  { %v498_v4 = vpop.eup %497  ;;  %393 = vmatpush.bf16.msrb.mxu0 %v485_v60 }
  0x1c   :  { %v95_v5 = vmul.f32 %v498_v4, %v93_v3  ;;  %vm100_vm2 = vweird.f32 %v498_v4 }
  0x1d   :  { %vm101_vm3 = vmor %vm99_vm1, %vm100_vm2 }
  0x1e   :  { %v96_v7 = vsub.f32 1.0, %v95_v5 }
  0x1f   :  { %394 = vmatpush.bf16.msrb.mxu0 %v484_v62 }
  0x20   :  { %v97_v9 = vmul.f32 %v498_v4, %v96_v7 }
  0x22   :  { %v98_v11 = vadd.f32 %v498_v4, %v97_v9 }
  0x23   :  { %395 = vmatpush.bf16.msrb.mxu0 %v483_v0 }
  0x24   :  { %v102_v13 = vsel %vm101_vm3, %v498_v4, %v98_v11  ;;  %v482_v4 = vld [vmem:[%s765_s8] sm:$0xff] }
  0x25   :  { %v107_v14 = vsel %vm104_vm4, %v106_v10, %v102_v13  ;;  %v273_v13 = vld [vmem:[#allocation9] sm:$0x1] }
  0x26   :  { %486 = vpush %v107_v14 }
  0x27   :  { %396 = vmatpush.bf16.msrb.mxu0 %v482_v4 }
  0x57   :  { %s487_s18 = spop %486 }
  0x58   :  { %v207_v24 = vstv %s487_s18 }
  0x97   :  { %v154_v15 = vpop.f32.mrf.mxu0 }
  0x98   :  { %v185_v21 = vmul.f32 %v154_v15, %v154_v15 }
  0x9f   :  { %v156_v19 = vpop.f32.mrf.mxu0 }
  0xa0   :  { %179 = vmatpush.msra.mxu1 %v156_v19  ;;  %v186_v20 = vmul.f32 %v156_v19, %v156_v19 }
  0xa2   :  { %180 = vmatpush.msra.mxu1 %v154_v15  ;;  %201 = vmatpush.msra.mxu2 %v186_v20 }
  0xa3   :  { %447 = vmatmul.msk.f32.vlgmr.msra.gmra.mxu1 %vm161_vm8, %v117_v23 }
  0xa4   :  { %202 = vmatpush.msra.mxu2 %v185_v21 }
  0xa5   :  { %448 = vmatmul.msk.f32.vlgmr.msra.gmra.mxu2 %vm161_vm8, %v117_v23 }
 0x120   :  { %v182_v25 = vpop.f32.mrf.mxu1 }
 0x121   :  { %v208_v26 = vmul.f32 %v207_v24, %v182_v25 }
 0x123   :  { %v210_v29 = vmul.f32 %v208_v26, %v208_v26 }
 0x128   :  { %v204_v30 = vpop.f32.mrf.mxu2 }
 0x129   :  { %v209_v31 = vmul.f32 %v207_v24, %v204_v30 }
 0x12b   :  { %v211_v32 = vsub.f32 %v209_v31, %v210_v29  ;;  %v496_v29 = vld [vmem:[%s766_s9] ss:$0 sm:$0xff]  ;;  %s641_s9 = smov 128  }
 0x12d   :  { %v212_v33 = vmax.f32 %v211_v32, 0.0 }
 0x12f   :  { %v213_v34 = vadd.f32 1e-05, %v212_v33 }
 0x131   :  { %499 = vrsqrt.f32 %v213_v34  ;;  %vm220_vm10 = vweird.f32 %v213_v34 }
 0x137   :  { %v500_v35 = vpop.eup %499 }
 0x138   :  { %v215_v36 = vmul.f32 %v500_v35, %v213_v34  ;;  %vm221_vm9 = vweird.f32 %v500_v35 }
 0x139   :  { %vm222_vm11 = vmor %vm220_vm10, %vm221_vm9 }
 0x13a   :  { %v216_v37 = vmul.f32 %v500_v35, %v215_v36 }
 0x13c   :  { %v217_v38 = vmul.f32 0.5, %v216_v37 }
 0x13e   :  { %v218_v39 = vsub.f32 1.5, %v217_v38 }
 0x140   :  { %v219_v41 = vmul.f32 %v500_v35, %v218_v39 }
 0x142   :  { %v223_v42 = vsel %vm222_vm11, %v500_v35, %v219_v41 }
 0x143   :  { %v224_v43 = vmul.f32 %v223_v42, %v159_v40 }
 0x145   :  { %v225_v45 = vmul.f32 %v224_v43, %v208_v26  ;;  %v228_v46 = vperm.slane %v224_v43, 0 }
 0x147   :  { %v226_v47 = vsub.f32 %v160_v44, %v225_v45  ;;  %v230_v48 = vmul.f32 %v228_v46, %v154_v15  ;;  %v231_v49 = vmul.f32 %v228_v46, %v156_v19 }
 0x149   :  { %v233_v50 = vperm.slane %v226_v47, 0 }
 0x14b   :  { %v235_v51 = vadd.f32 %v233_v50, %v230_v48  ;;  %v236_v52 = vadd.f32 %v233_v50, %v231_v49 }
 0x14d   :  { %v237_v53 = vmax.f32 %v235_v51, 0.0  ;;  %v238_v54 = vmax.f32 %v236_v52, 0.0 }
 0x14f   :  { %v239_v55 = vpack.c.bf16 %v238_v54, %v237_v53 }
 0x151   :  { %457 = vmatmul.msk.bf16.vlgmr.msra.gmra.mxu3 %vm141_vm0, %v239_v55 }
 0x1d4   :  { %v268_v56 = vpop.f32.mrf.mxu3 }
 0x1d5   :  { %v295_v59 = vmul.f32 %v268_v56, %v268_v56 }
 0x1dc   :  { %v270_v57 = vpop.f32.mrf.mxu3 }
 0x1dd   :  { %289 = vmatpush.msrb.mxu1 %v270_v57  ;;  %v296_v58 = vmul.f32 %v270_v57, %v270_v57 }
 0x1df   :  { %290 = vmatpush.msrb.mxu1 %v268_v56  ;;  %311 = vmatpush.msrb.mxu2 %v296_v58 }
 0x1e0   :  { %458 = vmatmul.msk.f32.vlgmr.msrb.gmra.mxu1 %vm161_vm8, %v117_v23 }
 0x1e1   :  { %312 = vmatpush.msrb.mxu2 %v295_v59 }
 0x1e2   :  { %459 = vmatmul.msk.f32.vlgmr.msrb.gmra.mxu2 %vm161_vm8, %v117_v23 }
 0x25d   :  { %v292_v61 = vpop.f32.mrf.mxu1 }
 0x25e   :  { %v317_v63 = vmul.f32 %v292_v61, %v207_v24 }
 0x260   :  { %v319_v2 = vmul.f32 %v317_v63, %v317_v63 }
 0x265   :  { %v314_v1 = vpop.f32.mrf.mxu2 }
 0x266   :  { %v318_v3 = vmul.f32 %v314_v1, %v207_v24 }
 0x268   :  { %v320_v5 = vsub.f32 %v318_v3, %v319_v2 }
 0x26a   :  { %v321_v6 = vmax.f32 %v320_v5, 0.0 }
 0x26c   :  { %v322_v7 = vadd.f32 1e-05, %v321_v6 }
 0x26e   :  { %501 = vrsqrt.f32 %v322_v7  ;;  %vm329_vm13 = vweird.f32 %v322_v7 }
 0x274   :  { %v502_v8 = vpop.eup %501 }
 0x275   :  { %v324_v9 = vmul.f32 %v502_v8, %v322_v7  ;;  %vm330_vm12 = vweird.f32 %v502_v8 }
 0x276   :  { %vm331_vm14 = vmor %vm329_vm13, %vm330_vm12 }
 0x277   :  { %v325_v10 = vmul.f32 %v502_v8, %v324_v9 }
 0x279   :  { %v326_v11 = vmul.f32 0.5, %v325_v10 }
 0x27b   :  { %v327_v12 = vsub.f32 1.5, %v326_v11 }
 0x27d   :  { %v328_v14 = vmul.f32 %v502_v8, %v327_v12 }
 0x27f   :  { %v332_v15 = vsel %vm331_vm14, %v502_v8, %v328_v14 }
 0x280   :  { %v333_v16 = vmul.f32 %v332_v15, %v273_v13 }
 0x282   :  { %v334_v18 = vmul.f32 %v333_v16, %v317_v63  ;;  %v337_v19 = vperm.slane %v333_v16, 0 }
 0x284   :  { %v335_v20 = vsub.f32 %v274_v17, %v334_v18  ;;  %v339_v21 = vmul.f32 %v337_v19, %v268_v56  ;;  %v340_v22 = vmul.f32 %v337_v19, %v270_v57 }
 0x286   :  { %v342_v23 = vperm.slane %v335_v20, 0 }
 0x288   :  { %v344_v24 = vadd.f32 %v342_v23, %v339_v21  ;;  %v345_v25 = vadd.f32 %v342_v23, %v340_v22 }
 0x28a   :  { %v346_v26 = vmax.f32 %v344_v24, 0.0  ;;  %v347_v27 = vmax.f32 %v345_v25, 0.0 }
 0x28c   :  { %v348_v28 = vpack.c.bf16 %v347_v27, %v346_v26 }
 0x28e   :  { %476 = vmatmul.msk.bf16.vlgmr.msrb.gmra.mxu0 %vm385_vm15, %v348_v28 }
 0x30b   :  { %v398_v30 = vpop.f32.mrf.mxu0 }
 0x30c   :  { %v399_v31 = vadd.f32 %v496_v29, %v398_v30 }
 0x30e   :  { %v403_v32 = vmul.f32 0.5, %v399_v31 }
 0x310   :  { %503 = vtanh.f32 %v403_v32 }
 0x313   :  { %v400_v33 = vpop.f32.mrf.mxu0 }
 0x314   :  { %v401_v34 = vadd.f32 %v496_v29, %v400_v33 }
 0x316   :  { %v504_v35 = vpop.eup %503  ;;  %v404_v36 = vmul.f32 0.5, %v401_v34 }
 0x317   :  { %v407_v37 = vmul.f32 0.5, %v504_v35 }
 0x318   :  { %505 = vtanh.f32 %v404_v36 }
 0x319   :  { %v409_v38 = vadd.f32 0.5, %v407_v37 }
 0x31b   :  { %411 = vst.msk [vmem:[#allocation12] sm:$0xff] %vm161_vm8, %v409_v38 }
 0x31e   :  { %v506_v39 = vpop.eup %505 }
 0x31f   :  { %v408_v40 = vmul.f32 0.5, %v506_v39 }
 0x321   :  { %v410_v41 = vadd.f32 0.5, %v408_v40 }
 0x323   :  { %412 = vst.msk [vmem:[#allocation12 + $0x8] sm:$0xff] %vm161_vm8, %v410_v41 }
 0x324   :  { %425 = dma.vmem_to_hbm [thread:$0]  %s418_s3, 256, %s420_s11, [#allocation6], %s641_s9, %s641_s9, %s642_s7  }
 0x325   :  { %633 = dma.done.wait [#allocation6], 256  }
 0x326   :  { %634 = vsyncadd [#allocation6], 4294967040 }
 0x327   :  { %430 = vsyncpa [#allocation5], 1 }
 0x328   :  { %431 = vsyncpa [#allocation8], 1 }
 0x329   :  { %432 = vsyncpa [#allocation11], 1 }
 0x32a   :  { %433 = vsyncpa [#allocation6], 1 }

</bundles_post_ra>
